<compile_context>
chip_gen: v5e
topology: v5e:2x2
jax: 0.10.0
libtpu: 0.0.40
codegen_flags: <defaults>
</compile_context>

<pallas_src>
import functools
from typing import Optional, Tuple, Union

import jax
import jax.numpy as jnp
from jax.experimental import pallas as pl
from jax.experimental.pallas import tpu as pltpu

IntOrPair = Union[int, Tuple[int, int]]
Pair = Tuple[int, int]

_LANE = 128


def force_pair(v: IntOrPair) -> Pair:
    """Convert v to a pair of int, if it isn't already."""
    if isinstance(v, tuple):
        if len(v) != 2:
            raise ValueError(v)
        return (int(v[0]), int(v[1]))
    elif isinstance(v, int):
        return (v, v)
    raise ValueError(v)


def _ceil_div(a: int, b: int) -> int:
    return -(-a // b)


def _dtype_min(dtype):
    """Identity element for max in this dtype (guards non-float inputs)."""
    if jnp.issubdtype(dtype, jnp.floating):
        return float("-inf")
    if jnp.issubdtype(dtype, jnp.integer):
        return int(jnp.iinfo(dtype).min)
    raise ValueError(f"maxpool2d: unsupported dtype {dtype}")


def _vmem_budget() -> Tuple[int, int]:
    """Returns (accounted-buffer budget, vmem_limit_bytes) per chip generation."""
    try:
        cap = int(pltpu.get_tpu_info().vmem_capacity_bytes)
    except Exception:
        cap = 64 * 1024 * 1024  # conservative fallback (v7x-sized VMEM)
    # Headroom is left for Mosaic-internal scratch; the accounted budget
    # already includes the 2x double-buffering of inputs and outputs.
    limit = min((cap * 3) // 4, 100 * 1024 * 1024)      # v5e/v6e: 96 MiB, v7x: 48 MiB
    budget = max(limit - 16 * 1024 * 1024, limit // 2)  # v5e/v6e: 80 MiB, v7x: 32 MiB
    return budget, limit


def _maxpool_kernel(x_ref, o_ref, *, kh, kw, sh, sw, oh, ow, h, w, ph, pw, min_val):
    """One (h, w, Nblk) channels-last block -> (oh, ow, Nblk) pooled block.

    For every window offset (i, j) the valid output sub-rectangle and the
    matching strided read window in x are static, so -inf padding is never
    materialized: out-of-bounds window elements simply contribute nothing
    (the output starts at the dtype's min where needed).
    """

    def ds(start, size, stride):
        return pl.ds(start, size) if stride == 1 else pl.ds(start, size, stride)

    full_cover = []     # offsets whose window is valid for every output pixel
    partial_cover = []  # offsets valid only on an interior sub-rectangle
    for i in range(kh):
        for j in range(kw):
            oi_lo = max(0, _ceil_div(ph - i, sh))
            oi_hi = min(oh, (h - 1 + ph - i) // sh + 1)
            oj_lo = max(0, _ceil_div(pw - j, sw))
            oj_hi = min(ow, (w - 1 + pw - j) // sw + 1)
            if oi_hi <= oi_lo or oj_hi <= oj_lo:
                continue  # this offset lies entirely in the padding
            rec = (oi_lo, oi_hi, oj_lo, oj_hi,
                   oi_lo * sh + i - ph, oj_lo * sw + j - pw)
            if (oi_lo, oi_hi, oj_lo, oj_hi) == (0, oh, 0, ow):
                full_cover.append(rec)
            else:
                partial_cover.append(rec)

    def window(rec):
        oi_lo, oi_hi, oj_lo, oj_hi, h0, w0 = rec
        # Strides act only on the outer (H) and sublane (W) axes; the lane
        # axis (channels) is always read densely.
        return x_ref[ds(h0, oi_hi - oi_lo, sh), ds(w0, oj_hi - oj_lo, sw), :]

    # Full-coverage offsets accumulate in registers (exact max, input dtype).
    if full_cover:
        acc = window(full_cover[0])
        for rec in full_cover[1:]:
            acc = jnp.maximum(acc, window(rec))
        o_ref[...] = acc
    else:
        o_ref[...] = jnp.full(o_ref.shape, min_val, dtype=o_ref.dtype)

    # Boundary offsets update only their valid output sub-rectangle.
    for rec in partial_cover:
        oi_lo, oi_hi, oj_lo, oj_hi, _, _ = rec
        o_ref[oi_lo:oi_hi, oj_lo:oj_hi, :] = jnp.maximum(
            o_ref[oi_lo:oi_hi, oj_lo:oj_hi, :], window(rec))


def maxpool2d_pallas_hwn(
    xt: jax.Array,
    kernel_size: IntOrPair,
    stride: Optional[IntOrPair] = None,
    padding: IntOrPair = 0,
) -> jax.Array:
    """Channels-last maxpool core. xt: (H, W, N); returns (OH, OW, N).

    Channels-last callers should use this entry point directly to avoid the
    NCHW relayout HBM traffic of maxpool2d_pallas.
    """
    kh, kw = force_pair(kernel_size)
    sh, sw = (kh, kw) if stride is None else force_pair(stride)
    ph, pw = force_pair(padding)
    if 2 * ph > kh or 2 * pw > kw:
        raise ValueError("padding must be at most half of kernel size")

    H, W, N = xt.shape
    OH = 1 + (H + 2 * ph - kh) // sh
    OW = 1 + (W + 2 * pw - kw) // sw
    if OH <= 0 or OW <= 0:
        raise ValueError("pooling window larger than (padded) input")

    itemsize = jnp.dtype(xt.dtype).itemsize
    min_val = _dtype_min(xt.dtype)
    budget, vmem_limit = _vmem_budget()

    # ---- block selection ---------------------------------------------------
    # Per-lane bytes: double-buffered input block + double-buffered output.
    per_lane_full = (2 * H * W + 2 * OH * OW) * itemsize
    min_lanes = N if N <= _LANE else _LANE

    oh_blk, h_blk = OH, H
    can_tile_h = (ph == 0) and (kh <= sh) and (OH * sh <= H)
    if per_lane_full * min_lanes > budget and can_tile_h:
        # Plane too big even for a minimal lane block: tile output rows.
        # Valid because windows never cross row-block boundaries here.
        nblk = min_lanes
        oh_blk = 1
        for d in range(OH, 0, -1):
            if OH % d == 0 and (2 * d * sh * W + 2 * d * OW) * itemsize * nblk <= budget:
                oh_blk = d
                break
        h_blk = oh_blk * sh
    else:
        # Lane-axis tiling only.
        if N <= _LANE:
            nblk = N
        else:
            lanes_budget = max(1, budget // per_lane_full)
            n_blocks = _ceil_div(N, _LANE)                  # 128-lane groups
            per_step = max(1, min(lanes_budget // _LANE, n_blocks))
            if per_step >= n_blocks and n_blocks >= 2:
                # Never emit a 1-step grid when we can split: keeps both v7x
                # TensorCores busy; harmless on 1-TC v5e/v6e.
                per_step = _ceil_div(n_blocks, 2)
            nblk = per_step * _LANE

    n_pad = nblk * _ceil_div(N, nblk)
    if n_pad != N:
        xt = jnp.pad(xt, ((0, 0), (0, 0), (0, n_pad - N)))
    grid_n = n_pad // nblk
    grid_h = OH // oh_blk

    kernel = functools.partial(
        _maxpool_kernel,
        kh=kh, kw=kw, sh=sh, sw=sw,
        oh=oh_blk, ow=OW, h=h_blk, w=W, ph=ph, pw=pw, min_val=min_val,
    )

    out = pl.pallas_call(
        kernel,
        out_shape=jax.ShapeDtypeStruct((OH, OW, n_pad), xt.dtype),
        grid=(grid_n, grid_h),
        in_specs=[pl.BlockSpec((h_blk, W, nblk), lambda n, hb: (hb, 0, n))],
        out_specs=pl.BlockSpec((oh_blk, OW, nblk), lambda n, hb: (hb, 0, n)),
        compiler_params=pltpu.CompilerParams(
            dimension_semantics=("parallel", "parallel"),
            vmem_limit_bytes=vmem_limit,
        ),
    )(xt)

    return out[:, :, :N] if n_pad != N else out


def maxpool2d_pallas(
    x: jax.Array,
    kernel_size: IntOrPair,
    stride: Optional[IntOrPair] = None,
    padding: IntOrPair = 0,
) -> jax.Array:
    """Pallas equivalent of the reference maxpool2d. x: (B, C, H, W)."""
    B, C, H, W = x.shape
    N = B * C
    # NOTE(perf): the two relayouts below are pure layout plumbing to honour
    # the module's NCHW contract (a BlockSpec cannot transpose during DMA).
    # They dominate extra HBM traffic for this mem-bound op; channels-last
    # pipelines should call maxpool2d_pallas_hwn directly instead.
    xt = jnp.transpose(jnp.reshape(x, (N, H, W)), (1, 2, 0))   # (H, W, B*C)
    out = maxpool2d_pallas_hwn(xt, kernel_size, stride, padding)
    OH, OW, _ = out.shape
    return jnp.reshape(jnp.transpose(out, (2, 0, 1)), (B, C, OH, OW))


class MaxPool2d:
    """Mirror of the spec's MaxPool2d module (no parameters).

    Note: the spec module defaults padding=1 (unlike torch.nn.MaxPool2d's 0);
    we match the spec.
    """

    def __init__(
        self,
        kernel_size: IntOrPair,
        stride: Optional[IntOrPair] = None,
        padding: IntOrPair = 1,
    ):
        self.kernel_size = kernel_size
        self.stride = stride
        self.padding = padding

    def __call__(self, x: jax.Array) -> jax.Array:
        return maxpool2d_pallas(x, self.kernel_size, self.stride, self.padding)

    def extra_repr(self) -> str:
        return (
            f"kernel_size: {self.kernel_size}, stride: {self.stride}, "
            f"padding: {self.padding}"
        )


def _maxpool2d_ref(x, kernel_size, stride=None, padding=0):
    """Pure-JAX reference (matches the PyTorch strided-view implementation)."""
    kh, kw = force_pair(kernel_size)
    sh, sw = (kh, kw) if stride is None else force_pair(stride)
    ph, pw = force_pair(padding)
    xp = jnp.pad(
        x, ((0, 0), (0, 0), (ph, ph), (pw, pw)), constant_values=-jnp.inf
    )
    return jax.lax.reduce_window(
        xp,
        -jnp.inf,
        jax.lax.max,
        window_dimensions=(1, 1, kh, kw),
        window_strides=(1, 1, sh, sw),
        padding="VALID",
    )


if __name__ == "__main__":
    key = jax.random.PRNGKey(0)
    x = jax.random.normal(key, (2, 4, 16, 16), dtype=jnp.float32)

    # Module defaults: kernel_size=2, stride=None (-> kernel_size), padding=1.
    pool = MaxPool2d(kernel_size=2, stride=None, padding=1)
    out = jax.block_until_ready(pool(x))
    ref = _maxpool2d_ref(x, pool.kernel_size, pool.stride, pool.padding)
    assert out.shape == ref.shape, (out.shape, ref.shape)
    assert out.dtype == ref.dtype, (out.dtype, ref.dtype)
    assert jnp.allclose(out, ref), "Pallas maxpool2d mismatch vs reference"

    # Rectangular kernel + explicit stride + asymmetric padding.
    pool2 = MaxPool2d(kernel_size=(3, 2), stride=(2, 3), padding=(1, 0))
    out2 = jax.block_until_ready(pool2(x))
    ref2 = _maxpool2d_ref(x, pool2.kernel_size, pool2.stride, pool2.padding)
    assert out2.shape == ref2.shape
    assert jnp.allclose(out2, ref2), "Pallas maxpool2d mismatch (config 2)"

    # Zero-padding config exercises the pure full-coverage fast path.
    pool3 = MaxPool2d(kernel_size=2, stride=2, padding=0)
    out3 = jax.block_until_ready(pool3(x))
    ref3 = _maxpool2d_ref(x, 2, 2, 0)
    assert out3.shape == ref3.shape
    assert jnp.allclose(out3, ref3), "Pallas maxpool2d mismatch (config 3)"

    # Overlapping windows (stride 1) + padding exercises mixed full/partial path.
    pool4 = MaxPool2d(kernel_size=3, stride=1, padding=1)
    out4 = jax.block_until_ready(pool4(x))
    ref4 = _maxpool2d_ref(x, 3, 1, 1)
    assert out4.shape == ref4.shape
    assert jnp.allclose(out4, ref4), "Pallas maxpool2d mismatch (config 4)"

    print("KERNEL_OK")
</pallas_src>

<mosaic_0001>
module attributes {stable_mosaic.version = 11 : i64} {
  func.func @_maxpool_kernel(%arg0: i32, %arg1: i32, %arg2: memref<16x16x8xf32, #tpu.memory_space<vmem>>, %arg3: memref<9x9x8xf32, #tpu.memory_space<vmem>>) attributes {dimension_semantics = [#tpu.dimension_semantics<parallel>, #tpu.dimension_semantics<parallel>], iteration_bounds = array<i64: 1, 1>, scalar_prefetch = 0 : i64, scratch_operands = 0 : i64, tpu.core_type = #tpu.core_type<tc>, window_params = [{transform_indices = @transform_0, window_bounds = array<i64: 16, 16, 8>}, {transform_indices = @transform_1, window_bounds = array<i64: 9, 9, 8>}]} {
    %cst = arith.constant 0xFF800000 : f32
    %0 = vector.broadcast %cst : f32 to vector<9x9x8xf32>
    %c0 = arith.constant 0 : index
    %c0_0 = arith.constant 0 : index
    %c0_1 = arith.constant 0 : index
    %1 = vector.load %arg3[%c0, %c0_0, %c0_1] : memref<9x9x8xf32, #tpu.memory_space<vmem>>, vector<9x9x8xf32>
    tpu.vector_store %arg3[%c0, %c0_0, %c0_1], %0 {strides = array<i32>} : memref<9x9x8xf32, #tpu.memory_space<vmem>>, vector<9x9x8xf32>,
    %c1 = arith.constant 1 : index
    %c1_2 = arith.constant 1 : index
    %c0_3 = arith.constant 0 : index
    %2 = vector.load %arg3[%c1, %c1_2, %c0_3] : memref<9x9x8xf32, #tpu.memory_space<vmem>>, vector<8x8x8xf32>
    %c1_4 = arith.constant 1 : index
    %c1_5 = arith.constant 1 : index
    %c0_6 = arith.constant 0 : index
    %3 = tpu.strided_load %arg2[%c1_4, %c1_5, %c0_6] {strides = array<i32: 2, 2, 1>} : memref<16x16x8xf32, #tpu.memory_space<vmem>>, vector<8x8x8xf32>
    %4 = arith.maximumf %2, %3 : vector<8x8x8xf32>
    %c1_7 = arith.constant 1 : index
    %c1_8 = arith.constant 1 : index
    %c0_9 = arith.constant 0 : index
    %5 = vector.load %arg3[%c1_7, %c1_8, %c0_9] : memref<9x9x8xf32, #tpu.memory_space<vmem>>, vector<8x8x8xf32>
    tpu.vector_store %arg3[%c1_7, %c1_8, %c0_9], %4 {strides = array<i32>} : memref<9x9x8xf32, #tpu.memory_space<vmem>>, vector<8x8x8xf32>,
    %c1_10 = arith.constant 1 : index
    %c0_11 = arith.constant 0 : index
    %c0_12 = arith.constant 0 : index
    %6 = vector.load %arg3[%c1_10, %c0_11, %c0_12] : memref<9x9x8xf32, #tpu.memory_space<vmem>>, vector<8x8x8xf32>
    %c1_13 = arith.constant 1 : index
    %c0_14 = arith.constant 0 : index
    %c0_15 = arith.constant 0 : index
    %7 = tpu.strided_load %arg2[%c1_13, %c0_14, %c0_15] {strides = array<i32: 2, 2, 1>} : memref<16x16x8xf32, #tpu.memory_space<vmem>>, vector<8x8x8xf32>
    %8 = arith.maximumf %6, %7 : vector<8x8x8xf32>
    %c1_16 = arith.constant 1 : index
    %c0_17 = arith.constant 0 : index
    %c0_18 = arith.constant 0 : index
    %9 = vector.load %arg3[%c1_16, %c0_17, %c0_18] : memref<9x9x8xf32, #tpu.memory_space<vmem>>, vector<8x8x8xf32>
    tpu.vector_store %arg3[%c1_16, %c0_17, %c0_18], %8 {strides = array<i32>} : memref<9x9x8xf32, #tpu.memory_space<vmem>>, vector<8x8x8xf32>,
    %c0_19 = arith.constant 0 : index
    %c1_20 = arith.constant 1 : index
    %c0_21 = arith.constant 0 : index
    %10 = vector.load %arg3[%c0_19, %c1_20, %c0_21] : memref<9x9x8xf32, #tpu.memory_space<vmem>>, vector<8x8x8xf32>
    %c0_22 = arith.constant 0 : index
    %c1_23 = arith.constant 1 : index
    %c0_24 = arith.constant 0 : index
    %11 = tpu.strided_load %arg2[%c0_22, %c1_23, %c0_24] {strides = array<i32: 2, 2, 1>} : memref<16x16x8xf32, #tpu.memory_space<vmem>>, vector<8x8x8xf32>
    %12 = arith.maximumf %10, %11 : vector<8x8x8xf32>
    %c0_25 = arith.constant 0 : index
    %c1_26 = arith.constant 1 : index
    %c0_27 = arith.constant 0 : index
    %13 = vector.load %arg3[%c0_25, %c1_26, %c0_27] : memref<9x9x8xf32, #tpu.memory_space<vmem>>, vector<8x8x8xf32>
    tpu.vector_store %arg3[%c0_25, %c1_26, %c0_27], %12 {strides = array<i32>} : memref<9x9x8xf32, #tpu.memory_space<vmem>>, vector<8x8x8xf32>,
    %c0_28 = arith.constant 0 : index
    %c0_29 = arith.constant 0 : index
    %c0_30 = arith.constant 0 : index
    %14 = vector.load %arg3[%c0_28, %c0_29, %c0_30] : memref<9x9x8xf32, #tpu.memory_space<vmem>>, vector<8x8x8xf32>
    %c0_31 = arith.constant 0 : index
    %c0_32 = arith.constant 0 : index
    %c0_33 = arith.constant 0 : index
    %15 = tpu.strided_load %arg2[%c0_31, %c0_32, %c0_33] {strides = array<i32: 2, 2, 1>} : memref<16x16x8xf32, #tpu.memory_space<vmem>>, vector<8x8x8xf32>
    %16 = arith.maximumf %14, %15 : vector<8x8x8xf32>
    %c0_34 = arith.constant 0 : index
    %c0_35 = arith.constant 0 : index
    %c0_36 = arith.constant 0 : index
    %17 = vector.load %arg3[%c0_34, %c0_35, %c0_36] : memref<9x9x8xf32, #tpu.memory_space<vmem>>, vector<8x8x8xf32>
    tpu.vector_store %arg3[%c0_34, %c0_35, %c0_36], %16 {strides = array<i32>} : memref<9x9x8xf32, #tpu.memory_space<vmem>>, vector<8x8x8xf32>,
    return
  }
  func.func @transform_0(%arg0: i32, %arg1: i32) -> (i32, i32, i32) {
    %c0_i32 = arith.constant 0 : i32
    %c0_i32_0 = arith.constant 0 : i32
    return %arg1, %c0_i32, %arg0 : i32, i32, i32
  }
  func.func @transform_1(%arg0: i32, %arg1: i32) -> (i32, i32, i32) {
    %c0_i32 = arith.constant 0 : i32
    %c0_i32_0 = arith.constant 0 : i32
    return %arg1, %c0_i32, %arg0 : i32, i32, i32
  }
}

</mosaic_0001>

<bundles_post_ra>
// kernel: tpu_custom_call.1
= control target key start
LH: loop header
LB: loop body
LE: loop exit
PB: predicated region body
PF: predicated region fallthrough
CT: control target
= control target key end

     0   :  { %vm8_vm0 = vcmask 64512   ;;  %v271_v0 = vmov -inf   ;;  %vm10_vm1 = vcmask 57344   ;;  %s674_s1 = inlined_call_operand.vmem [shape: f32[9,9,8], index: 1, kind: output, shape index: {}]   ;;  %s675_s0 = inlined_call_operand.vmem [shape: f32[16,16,8], index: 0, kind: input, shape index: {}]  }
   0x1   :  { %12 = vst.msk [vmem:[%s674_s1 + $0x10] sm:$0xff] %vm8_vm0, %v271_v0  ;;  %v215_v1 = vld [vmem:[%s675_s0 + $0x11] ss:$2 sm:$0xff]  ;;  %v255_v2 = vld [vmem:[%s675_s0 + $0x1] ss:$2 sm:$0xff] }
   0x2   :  { %9 = vst.msk [vmem:[%s674_s1] sm:$0xff] %vm8_vm0, %v271_v0  ;;  %v216_v4 = vld [vmem:[%s675_s0 + $0x31] ss:$2 sm:$0xff]  ;;  %v239_v27 = vld [vmem:[%s675_s0 + $0x10] ss:$2 sm:$0xff] }
   0x3   :  { %14 = vst.msk [vmem:[%s674_s1 + $0x20] sm:$0xff] %vm8_vm0, %v271_v0  ;;  %v217_v6 = vld [vmem:[%s675_s0 + $0x51] ss:$2 sm:$0xff]  ;;  %v157_v29 = vld [vmem:[%s675_s0] ss:$2 sm:$0xff] }
   0x4   :  { %16 = vst.msk [vmem:[%s674_s1 + $0x30] sm:$0xff] %vm8_vm0, %v271_v0  ;;  %v218_v9 = vld [vmem:[%s675_s0 + $0x71] ss:$2 sm:$0xff]  ;;  %v240_v31 = vld [vmem:[%s675_s0 + $0x30] ss:$2 sm:$0xff] }
   0x5   :  { %18 = vst.msk [vmem:[%s674_s1 + $0x40] sm:$0xff] %vm8_vm0, %v271_v0  ;;  %v219_v13 = vld [vmem:[%s675_s0 + $0x91] ss:$2 sm:$0xff]  ;;  %v241_v33 = vld [vmem:[%s675_s0 + $0x50] ss:$2 sm:$0xff] }
   0x6   :  { %20 = vst.msk [vmem:[%s674_s1 + $0x50] sm:$0xff] %vm8_vm0, %v271_v0  ;;  %v220_v16 = vld [vmem:[%s675_s0 + $0xb1] ss:$2 sm:$0xff]  ;;  %v242_v36 = vld [vmem:[%s675_s0 + $0x70] ss:$2 sm:$0xff] }
   0x7   :  { %22 = vst.msk [vmem:[%s674_s1 + $0x60] sm:$0xff] %vm8_vm0, %v271_v0  ;;  %v221_v19 = vld [vmem:[%s675_s0 + $0xd1] ss:$2 sm:$0xff]  ;;  %v243_v40 = vld [vmem:[%s675_s0 + $0x90] ss:$2 sm:$0xff] }
   0x8   :  { %24 = vst.msk [vmem:[%s674_s1 + $0x70] sm:$0xff] %vm8_vm0, %v271_v0  ;;  %v222_v22 = vld [vmem:[%s675_s0 + $0xf1] ss:$2 sm:$0xff]  ;;  %v244_v43 = vld [vmem:[%s675_s0 + $0xb0] ss:$2 sm:$0xff] }
   0x9   :  { %26 = vst.msk [vmem:[%s674_s1 + $0x80] sm:$0xff] %vm8_vm0, %v271_v0  ;;  %v245_v46 = vld [vmem:[%s675_s0 + $0xd0] ss:$2 sm:$0xff]  ;;  %v256_v54 = vld [vmem:[%s675_s0 + $0x21] ss:$2 sm:$0xff] }
   0xa   :  { %13 = vst.msk [vmem:[%s674_s1 + $0x18] sm:$0x1] %vm10_vm1, %v271_v0  ;;  %v246_v49 = vld [vmem:[%s675_s0 + $0xf0] ss:$2 sm:$0xff]  ;;  %v257_v57 = vld [vmem:[%s675_s0 + $0x41] ss:$2 sm:$0xff] }
   0xb   :  { %11 = vst.msk [vmem:[%s674_s1 + $0x8] sm:$0x1] %vm10_vm1, %v271_v0  ;;  %v258_v59 = vld [vmem:[%s675_s0 + $0x61] ss:$2 sm:$0xff] }
   0xc   :  { %15 = vst.msk [vmem:[%s674_s1 + $0x28] sm:$0x1] %vm10_vm1, %v271_v0  ;;  %v259_v61 = vld [vmem:[%s675_s0 + $0x81] ss:$2 sm:$0xff] }
   0xd   :  { %17 = vst.msk [vmem:[%s674_s1 + $0x38] sm:$0x1] %vm10_vm1, %v271_v0 }
   0xe   :  { %19 = vst.msk [vmem:[%s674_s1 + $0x48] sm:$0x1] %vm10_vm1, %v271_v0 }
   0xf   :  { %21 = vst.msk [vmem:[%s674_s1 + $0x58] sm:$0x1] %vm10_vm1, %v271_v0 }
  0x10   :  { %23 = vst.msk [vmem:[%s674_s1 + $0x68] sm:$0x1] %vm10_vm1, %v271_v0 }
  0x11   :  { %25 = vst.msk [vmem:[%s674_s1 + $0x78] sm:$0x1] %vm10_vm1, %v271_v0  ;;  %v207_v3 = vld [vmem:[%s674_s1 + $0x11] sm:$0xff] }
  0x12   :  { %27 = vst.msk [vmem:[%s674_s1 + $0x88] sm:$0x1] %vm10_vm1, %v271_v0  ;;  %v54_v5 = vmax.f32 %v207_v3, %v215_v1  ;;  %v109_v7 = vld [vmem:[%s674_s1 + $0x1] sm:$0xff] }
  0x13   :  { %v208_v8 = vld [vmem:[%s674_s1 + $0x21] sm:$0xff]  ;;  %v133_v10 = vmax.f32 %v109_v7, %v255_v2 }
  0x14   :  { %223 = vst.msk [vmem:[%s674_s1 + $0x11] sm:$0xff] %vm8_vm0, %v54_v5  ;;  %v55_v11 = vmax.f32 %v208_v8, %v216_v4  ;;  %v209_v12 = vld [vmem:[%s674_s1 + $0x31] sm:$0xff]  ;;  %v260_v0 = vld [vmem:[%s675_s0 + $0xa1] ss:$2 sm:$0xff] }
  0x15   :  { %v56_v14 = vmax.f32 %v209_v12, %v217_v6  ;;  %v210_v15 = vld [vmem:[%s674_s1 + $0x41] sm:$0xff]  ;;  %141 = vst.msk [vmem:[%s674_s1 + $0x1] sm:$0xff] %vm8_vm0, %v133_v10 }
  0x16   :  { %224 = vst.msk [vmem:[%s674_s1 + $0x21] sm:$0xff] %vm8_vm0, %v55_v11  ;;  %v57_v17 = vmax.f32 %v210_v15, %v218_v9  ;;  %v211_v18 = vld [vmem:[%s674_s1 + $0x51] sm:$0xff]  ;;  %v261_v3 = vld [vmem:[%s675_s0 + $0xc1] ss:$2 sm:$0xff]  ;;  %v263_v12 = vld [vmem:[%s675_s0 + $0x20] ss:$2 sm:$0xff] }
  0x17   :  { %225 = vst.msk [vmem:[%s674_s1 + $0x31] sm:$0xff] %vm8_vm0, %v56_v14  ;;  %v58_v20 = vmax.f32 %v211_v18, %v219_v13  ;;  %v212_v21 = vld [vmem:[%s674_s1 + $0x61] sm:$0xff] }
  0x18   :  { %226 = vst.msk [vmem:[%s674_s1 + $0x41] sm:$0xff] %vm8_vm0, %v57_v17  ;;  %v59_v23 = vmax.f32 %v212_v21, %v220_v16  ;;  %v213_v24 = vld [vmem:[%s674_s1 + $0x71] sm:$0xff]  ;;  %v262_v6 = vld [vmem:[%s675_s0 + $0xe1] ss:$2 sm:$0xff]  ;;  %v264_v14 = vld [vmem:[%s675_s0 + $0x40] ss:$2 sm:$0xff] }
  0x19   :  { %227 = vst.msk [vmem:[%s674_s1 + $0x51] sm:$0xff] %vm8_vm0, %v58_v20  ;;  %v60_v25 = vmax.f32 %v213_v24, %v221_v19  ;;  %v214_v26 = vld [vmem:[%s674_s1 + $0x81] sm:$0xff] }
  0x1a   :  { %228 = vst.msk [vmem:[%s674_s1 + $0x61] sm:$0xff] %vm8_vm0, %v59_v23  ;;  %v61_v28 = vmax.f32 %v214_v26, %v222_v22  ;;  %v265_v16 = vld [vmem:[%s675_s0 + $0x60] ss:$2 sm:$0xff] }
  0x1b   :  { %229 = vst.msk [vmem:[%s674_s1 + $0x71] sm:$0xff] %vm8_vm0, %v60_v25  ;;  %v231_v30 = vld [vmem:[%s674_s1 + $0x10] sm:$0xff]  ;;  %v266_v18 = vld [vmem:[%s675_s0 + $0x80] ss:$2 sm:$0xff] }
  0x1c   :  { %230 = vst.msk [vmem:[%s674_s1 + $0x81] sm:$0xff] %vm8_vm0, %v61_v28  ;;  %v93_v32 = vmax.f32 %v231_v30, %v239_v27  ;;  %v149_v34 = vld [vmem:[%s674_s1] sm:$0xff] }
  0x1d   :  { %v232_v35 = vld [vmem:[%s674_s1 + $0x20] sm:$0xff]  ;;  %v172_v37 = vmax.f32 %v149_v34, %v157_v29 }
  0x1e   :  { %247 = vst.msk [vmem:[%s674_s1 + $0x10] sm:$0xff] %vm8_vm0, %v93_v32  ;;  %v94_v38 = vmax.f32 %v232_v35, %v240_v31  ;;  %v233_v39 = vld [vmem:[%s674_s1 + $0x30] sm:$0xff]  ;;  %v267_v21 = vld [vmem:[%s675_s0 + $0xa0] ss:$2 sm:$0xff] }
  0x1f   :  { %v95_v41 = vmax.f32 %v233_v39, %v241_v33  ;;  %v234_v42 = vld [vmem:[%s674_s1 + $0x40] sm:$0xff]  ;;  %180 = vst.msk [vmem:[%s674_s1] sm:$0xff] %vm8_vm0, %v172_v37 }
  0x20   :  { %248 = vst.msk [vmem:[%s674_s1 + $0x20] sm:$0xff] %vm8_vm0, %v94_v38  ;;  %v96_v44 = vmax.f32 %v234_v42, %v242_v36  ;;  %v235_v45 = vld [vmem:[%s674_s1 + $0x50] sm:$0xff]  ;;  %v268_v24 = vld [vmem:[%s675_s0 + $0xc0] ss:$2 sm:$0xff] }
  0x21   :  { %249 = vst.msk [vmem:[%s674_s1 + $0x30] sm:$0xff] %vm8_vm0, %v95_v41  ;;  %v97_v47 = vmax.f32 %v235_v45, %v243_v40  ;;  %v236_v48 = vld [vmem:[%s674_s1 + $0x60] sm:$0xff] }
  0x22   :  { %250 = vst.msk [vmem:[%s674_s1 + $0x40] sm:$0xff] %vm8_vm0, %v96_v44  ;;  %v98_v50 = vmax.f32 %v236_v48, %v244_v43  ;;  %v237_v51 = vld [vmem:[%s674_s1 + $0x70] sm:$0xff]  ;;  %v269_v27 = vld [vmem:[%s675_s0 + $0xe0] ss:$2 sm:$0xff] }
  0x23   :  { %251 = vst.msk [vmem:[%s674_s1 + $0x50] sm:$0xff] %vm8_vm0, %v97_v47  ;;  %v99_v52 = vmax.f32 %v237_v51, %v245_v46  ;;  %v238_v53 = vld [vmem:[%s674_s1 + $0x80] sm:$0xff] }
  0x24   :  { %252 = vst.msk [vmem:[%s674_s1 + $0x60] sm:$0xff] %vm8_vm0, %v98_v50  ;;  %v100_v55 = vmax.f32 %v238_v53, %v246_v49 }
  0x25   :  { %253 = vst.msk [vmem:[%s674_s1 + $0x70] sm:$0xff] %vm8_vm0, %v99_v52  ;;  %v110_v56 = vld [vmem:[%s674_s1 + $0x11] sm:$0xff] }
  0x26   :  { %254 = vst.msk [vmem:[%s674_s1 + $0x80] sm:$0xff] %vm8_vm0, %v100_v55  ;;  %v134_v58 = vmax.f32 %v110_v56, %v256_v54 }
  0x27   :  { %v111_v60 = vld [vmem:[%s674_s1 + $0x21] sm:$0xff] }
  0x28   :  { %142 = vst.msk [vmem:[%s674_s1 + $0x11] sm:$0xff] %vm8_vm0, %v134_v58  ;;  %v135_v62 = vmax.f32 %v111_v60, %v257_v57  ;;  %v112_v63 = vld [vmem:[%s674_s1 + $0x31] sm:$0xff] }
  0x29   :  { %v136_v1 = vmax.f32 %v112_v63, %v258_v59  ;;  %v113_v2 = vld [vmem:[%s674_s1 + $0x41] sm:$0xff] }
  0x2a   :  { %143 = vst.msk [vmem:[%s674_s1 + $0x21] sm:$0xff] %vm8_vm0, %v135_v62  ;;  %v137_v4 = vmax.f32 %v113_v2, %v259_v61  ;;  %v114_v5 = vld [vmem:[%s674_s1 + $0x51] sm:$0xff] }
  0x2b   :  { %144 = vst.msk [vmem:[%s674_s1 + $0x31] sm:$0xff] %vm8_vm0, %v136_v1  ;;  %v138_v7 = vmax.f32 %v114_v5, %v260_v0  ;;  %v115_v8 = vld [vmem:[%s674_s1 + $0x61] sm:$0xff] }
  0x2c   :  { %145 = vst.msk [vmem:[%s674_s1 + $0x41] sm:$0xff] %vm8_vm0, %v137_v4  ;;  %v139_v9 = vmax.f32 %v115_v8, %v261_v3  ;;  %v116_v10 = vld [vmem:[%s674_s1 + $0x71] sm:$0xff] }
  0x2d   :  { %146 = vst.msk [vmem:[%s674_s1 + $0x51] sm:$0xff] %vm8_vm0, %v138_v7  ;;  %v140_v11 = vmax.f32 %v116_v10, %v262_v6 }
  0x2e   :  { %147 = vst.msk [vmem:[%s674_s1 + $0x61] sm:$0xff] %vm8_vm0, %v139_v9 }
  0x2f   :  { %148 = vst.msk [vmem:[%s674_s1 + $0x71] sm:$0xff] %vm8_vm0, %v140_v11  ;;  %v150_v13 = vld [vmem:[%s674_s1 + $0x10] sm:$0xff] }
  0x30   :  { %v173_v15 = vmax.f32 %v150_v13, %v263_v12 }
  0x31   :  { %v151_v17 = vld [vmem:[%s674_s1 + $0x20] sm:$0xff] }
  0x32   :  { %181 = vst.msk [vmem:[%s674_s1 + $0x10] sm:$0xff] %vm8_vm0, %v173_v15  ;;  %v174_v19 = vmax.f32 %v151_v17, %v264_v14  ;;  %v152_v20 = vld [vmem:[%s674_s1 + $0x30] sm:$0xff] }
  0x33   :  { %v175_v22 = vmax.f32 %v152_v20, %v265_v16  ;;  %v153_v23 = vld [vmem:[%s674_s1 + $0x40] sm:$0xff] }
  0x34   :  { %182 = vst.msk [vmem:[%s674_s1 + $0x20] sm:$0xff] %vm8_vm0, %v174_v19  ;;  %v176_v25 = vmax.f32 %v153_v23, %v266_v18  ;;  %v154_v26 = vld [vmem:[%s674_s1 + $0x50] sm:$0xff] }
  0x35   :  { %183 = vst.msk [vmem:[%s674_s1 + $0x30] sm:$0xff] %vm8_vm0, %v175_v22  ;;  %v177_v28 = vmax.f32 %v154_v26, %v267_v21  ;;  %v155_v29 = vld [vmem:[%s674_s1 + $0x60] sm:$0xff] }
  0x36   :  { %184 = vst.msk [vmem:[%s674_s1 + $0x40] sm:$0xff] %vm8_vm0, %v176_v25  ;;  %v178_v30 = vmax.f32 %v155_v29, %v268_v24  ;;  %v156_v31 = vld [vmem:[%s674_s1 + $0x70] sm:$0xff] }
  0x37   :  { %185 = vst.msk [vmem:[%s674_s1 + $0x50] sm:$0xff] %vm8_vm0, %v177_v28  ;;  %v179_v32 = vmax.f32 %v156_v31, %v269_v27 }
  0x38   :  { %186 = vst.msk [vmem:[%s674_s1 + $0x60] sm:$0xff] %vm8_vm0, %v178_v30 }
  0x39   :  { %187 = vst.msk [vmem:[%s674_s1 + $0x70] sm:$0xff] %vm8_vm0, %v179_v32 }

</bundles_post_ra>
